<compile_context>
chip_gen: v5e
topology: v5e:2x2
jax: 0.10.0
libtpu: 0.0.40
codegen_flags: <defaults>
</compile_context>

<pallas_src>
import functools

import jax
import jax.numpy as jnp
from jax import lax
from jax.experimental import pallas as pl
from jax.experimental.pallas import tpu as pltpu

_MIB = 1024 * 1024


def _dice_kernel(logits_ref, tgt_ref, ones_ref,
                 inter_ref, pred_ref, tcnt_ref,
                 *, hw, tile, chunk, per_split, n_classes):
    """One (batch b, split s, tile i) step: chunked first-occurrence argmax,
    one-hot counting via MXU reductions, accumulation into (C, 1) outputs."""
    i = pl.program_id(2)

    @pl.when(i == 0)
    def _():
        inter_ref[...] = jnp.zeros_like(inter_ref)
        pred_ref[...] = jnp.zeros_like(pred_ref)
        tcnt_ref[...] = jnp.zeros_like(tcnt_ref)

    C = n_classes
    # Unclamped global tile index: the index_map clamps the DMA to stay in
    # bounds, while the validity mask below uses the unclamped index so
    # overflow / padded tiles contribute exactly zero.
    g = pl.program_id(1) * per_split + i
    base = g * tile

    # Loop invariants hoisted out of the inner loop (JAX does not CSE
    # broadcasts).
    class_ids = lax.broadcasted_iota(jnp.int32, (C, chunk), 0)
    lane = lax.broadcasted_iota(jnp.int32, (1, chunk), 1)
    ones_rhs = ones_ref[...]                                   # (chunk,128) bf16

    num_chunks = tile // chunk

    def body(j, carry):
        inter_acc, pred_acc, tcnt_acc = carry
        off = pl.multiple_of(j * chunk, chunk)
        x = logits_ref[:, pl.ds(off, chunk)]                   # (C, chunk) f32
        t = tgt_ref[:, pl.ds(off, chunk)].astype(jnp.int32)    # (1, chunk)

        # First-occurrence argmax over classes on raw logits (softmax is
        # monotone per pixel, so the one-hot prediction is unchanged; matches
        # torch.argmax tie semantics).
        maxv = jnp.max(x, axis=0, keepdims=True)               # (1, chunk)
        first_idx = jnp.min(jnp.where(x == maxv, class_ids, C),
                            axis=0, keepdims=True)             # (1, chunk)

        # Cheap tail / overflow masking on (1, chunk) index vectors: invalid
        # lanes get class id C, which never matches class_ids in [0, C).
        valid = (base + off + lane) < hw
        pred_idx = jnp.where(valid, first_idx, C)
        tgt_idx = jnp.where(valid, t, C)
        inter_idx = jnp.where(pred_idx == tgt_idx, tgt_idx, C)

        # One-hot masks as bf16 (0/1 exact) so the lane-axis reductions run on
        # the otherwise-idle MXU instead of the saturated VALU/XLU.
        pred_oh = (class_ids == pred_idx).astype(jnp.bfloat16)   # (C, chunk)
        tgt_oh = (class_ids == tgt_idx).astype(jnp.bfloat16)
        inter_oh = (class_ids == inter_idx).astype(jnp.bfloat16)

        pred_acc = pred_acc + jnp.dot(
            pred_oh, ones_rhs, preferred_element_type=jnp.float32)[:, :1]
        tcnt_acc = tcnt_acc + jnp.dot(
            tgt_oh, ones_rhs, preferred_element_type=jnp.float32)[:, :1]
        inter_acc = inter_acc + jnp.dot(
            inter_oh, ones_rhs, preferred_element_type=jnp.float32)[:, :1]
        return inter_acc, pred_acc, tcnt_acc

    zero = jnp.zeros((C, 1), jnp.float32)
    inter_p, pred_p, tcnt_p = lax.fori_loop(0, num_chunks, body,
                                            (zero, zero, zero))
    inter_ref[...] += inter_p
    pred_ref[...] += pred_p
    tcnt_ref[...] += tcnt_p


def multiclass_dice(logits_nchw, targets, *, n_classes=None, reduction="mean",
                    smooth=1.0, tile=None, vmem_limit_bytes=None):
    """JAX/Pallas equivalent of MulticlassDice(use_softmax=True, binarize=True,
    onehot_labels=True, reduction='mean')."""
    B, C, H, W = logits_nchw.shape
    n_classes = C if n_classes is None else n_classes
    assert n_classes == C, "kernel assumes n_classes == channel dim"
    HW = H * W

    # Inner sub-chunk: keep the (C, chunk) working set at ~8 vregs so the
    # elementwise chain stays in registers (no VMEM round-trips).
    chunk = max(128, min(4096, ((32 * 1024) // (4 * C)) // 128 * 128))
    chunk = min(chunk, pl.cdiv(HW, 128) * 128)

    # Generation-aware VMEM request (v7x has only 64 MiB physical VMEM).
    try:
        vmem_cap = int(pltpu.get_tpu_info().vmem_capacity_bytes)
    except Exception:
        vmem_cap = 64 * _MIB                        # conservative fallback
    if vmem_limit_bytes is None:
        vmem_limit_bytes = int(min(max(vmem_cap - 16 * _MIB, 24 * _MIB),
                                   112 * _MIB))

    # Pixel tile: as large as the budget allows (amortizes per-step overhead
    # at v7x bandwidth), multiple of `chunk`, capped at 256K lanes.
    if tile is None:
        budget = vmem_limit_bytes // 2
        # Conservative bytes/pixel across both double-buffered inputs:
        # logits 2*4*C, int8 target block padded to the sublane tile ~2*32.
        per_lane = 8 * C + 64
        tile = (budget // per_lane) // chunk * chunk
        tile = min(tile, 256 * 1024)
    tile = max(chunk, (int(tile) // chunk) * chunk)
    tile = min(tile, pl.cdiv(HW, chunk) * chunk)
    num_tiles = pl.cdiv(HW, tile)

    # Second "parallel" axis over pixel tiles keeps both v7x TensorCores busy
    # even when B == 1 (no effect on single-core v5e/v6e).
    nsplit = 2 if num_tiles >= 2 else 1
    per_split = pl.cdiv(num_tiles, nsplit)

    # Free reshapes only -- no transpose, no extra HBM pass.  Targets travel
    # as int8 (class ids < 128) to cut HBM bytes on v5e.
    logits3 = logits_nchw.astype(jnp.float32).reshape(B, C, HW)
    tgt3 = targets.astype(jnp.int8).reshape(B, 1, HW)
    ones_rhs = jnp.ones((chunk, 128), dtype=jnp.bfloat16)

    kernel = functools.partial(_dice_kernel, hw=HW, tile=tile, chunk=chunk,
                               per_split=per_split, n_classes=C)
    out_sds = jax.ShapeDtypeStruct((B, nsplit, C, 1), jnp.float32)

    def pix_map(b, s, i):
        # Clamp so the auto-DMA never walks past the last real tile; the
        # kernel's validity mask zeroes any overflow iterations.
        return (b, 0, jnp.minimum(s * per_split + i, num_tiles - 1))

    out_spec = pl.BlockSpec((None, None, C, 1), lambda b, s, i: (b, s, 0, 0))

    inter, pred, tcnt = pl.pallas_call(
        kernel,
        out_shape=(out_sds, out_sds, out_sds),
        grid_spec=pltpu.PrefetchScalarGridSpec(
            num_scalar_prefetch=0,
            grid=(B, nsplit, per_split),
            in_specs=[
                pl.BlockSpec((None, C, tile), pix_map),
                pl.BlockSpec((None, 1, tile), pix_map),
                pl.BlockSpec((chunk, 128), lambda b, s, i: (0, 0)),
            ],
            out_specs=(out_spec, out_spec, out_spec),
        ),
        compiler_params=pltpu.CompilerParams(
            dimension_semantics=("parallel", "parallel", "arbitrary"),
            vmem_limit_bytes=vmem_limit_bytes,
        ),
    )(logits3, tgt3, ones_rhs)

    # Tiny cross-(batch, split) combine + Dice division + reduction in JAX.
    inter_c = jnp.sum(inter[..., 0], axis=(0, 1))               # (C,)
    pred_c = jnp.sum(pred[..., 0], axis=(0, 1))
    tcnt_c = jnp.sum(tcnt[..., 0], axis=(0, 1))
    dice_per_class = (2.0 * inter_c + smooth) / (pred_c + tcnt_c + smooth)

    if reduction == "mean":
        return jnp.mean(dice_per_class)
    return dice_per_class


def _reference(logits, targets, smooth=1.0):
    """Plain-JAX reference mirroring the PyTorch module."""
    C = logits.shape[1]
    p = jax.nn.softmax(logits, axis=1)
    pred_oh = jax.nn.one_hot(jnp.argmax(p, axis=1), C, axis=1)
    tgt_oh = jax.nn.one_hot(targets, C, axis=1)
    dices = []
    for c in range(C):
        inter = jnp.sum(pred_oh[:, c] * tgt_oh[:, c])
        d = (2.0 * inter + smooth) / (
            jnp.sum(pred_oh[:, c]) + jnp.sum(tgt_oh[:, c]) + smooth)
        dices.append(d)
    return jnp.mean(jnp.stack(dices))


if __name__ == "__main__":
    key = jax.random.PRNGKey(0)
    k1, k2 = jax.random.split(key)
    B, C, H, W = 2, 4, 16, 16
    logits = jax.random.normal(k1, (B, C, H, W), dtype=jnp.float32)
    targets = jax.random.randint(k2, (B, H, W), 0, C, dtype=jnp.int32)

    dice = multiclass_dice(logits, targets, n_classes=C, reduction="mean",
                           smooth=1.0)
    dice = jax.block_until_ready(dice)

    ref = _reference(logits, targets, smooth=1.0)
    assert jnp.allclose(dice, ref, atol=1e-5), (dice, ref)
    print("KERNEL_OK")
</pallas_src>

<mosaic_0001>
module attributes {stable_mosaic.version = 11 : i64} {
  func.func @_dice_kernel(%arg0: i32, %arg1: i32, %arg2: i32, %arg3: memref<1x4x256xf32, #tpu.memory_space<vmem>>, %arg4: memref<1x1x256xi8, #tpu.memory_space<vmem>>, %arg5: memref<256x128xbf16, #tpu.memory_space<vmem>>, %arg6: memref<1x1x4x1xf32, #tpu.memory_space<vmem>>, %arg7: memref<1x1x4x1xf32, #tpu.memory_space<vmem>>, %arg8: memref<1x1x4x1xf32, #tpu.memory_space<vmem>>) attributes {dimension_semantics = [#tpu.dimension_semantics<parallel>, #tpu.dimension_semantics<parallel>, #tpu.dimension_semantics<arbitrary>], iteration_bounds = array<i64: 2, 1, 1>, scalar_prefetch = 0 : i64, scratch_operands = 0 : i64, tpu.core_type = #tpu.core_type<tc>, window_params = [{transform_indices = @transform_0, window_bounds = array<i64: 1, 4, 256>}, {transform_indices = @transform_1, window_bounds = array<i64: 1, 1, 256>}, {pipeline_mode = #tpu.pipeline_mode<synchronous>, transform_indices = @transform_2, window_bounds = array<i64: 256, 128>}, {transform_indices = @transform_3, window_bounds = array<i64: 1, 1, 4, 1>}, {transform_indices = @transform_4, window_bounds = array<i64: 1, 1, 4, 1>}, {transform_indices = @transform_5, window_bounds = array<i64: 1, 1, 4, 1>}]} {
    %c0_i32 = arith.constant 0 : i32
    %0 = arith.cmpi eq, %arg2, %c0_i32 : i32
    %1 = arith.extui %0 : i1 to i32
    %c0_i32_0 = arith.constant 0 : i32
    %2 = arith.cmpi ne, %1, %c0_i32_0 : i32
    scf.if %2 {
      %cst_42 = arith.constant 0.000000e+00 : f32
      %81 = vector.broadcast %cst_42 : f32 to vector<4x1xf32>
      %c0_43 = arith.constant 0 : index
      %c0_44 = arith.constant 0 : index
      %c0_45 = arith.constant 0 : index
      %c0_46 = arith.constant 0 : index
      %82 = vector.load %arg6[%c0_43, %c0_44, %c0_45, %c0_46] : memref<1x1x4x1xf32, #tpu.memory_space<vmem>>, vector<1x1x4x1xf32>
      %83 = vector.shape_cast %82 : vector<1x1x4x1xf32> to vector<4x1xf32>
      %84 = vector.shape_cast %81 : vector<4x1xf32> to vector<1x1x4x1xf32>
      tpu.vector_store %arg6[%c0_43, %c0_44, %c0_45, %c0_46], %84 {strides = array<i32>} : memref<1x1x4x1xf32, #tpu.memory_space<vmem>>, vector<1x1x4x1xf32>,
      %cst_47 = arith.constant 0.000000e+00 : f32
      %85 = vector.broadcast %cst_47 : f32 to vector<4x1xf32>
      %c0_48 = arith.constant 0 : index
      %c0_49 = arith.constant 0 : index
      %c0_50 = arith.constant 0 : index
      %c0_51 = arith.constant 0 : index
      %86 = vector.load %arg7[%c0_48, %c0_49, %c0_50, %c0_51] : memref<1x1x4x1xf32, #tpu.memory_space<vmem>>, vector<1x1x4x1xf32>
      %87 = vector.shape_cast %86 : vector<1x1x4x1xf32> to vector<4x1xf32>
      %88 = vector.shape_cast %85 : vector<4x1xf32> to vector<1x1x4x1xf32>
      tpu.vector_store %arg7[%c0_48, %c0_49, %c0_50, %c0_51], %88 {strides = array<i32>} : memref<1x1x4x1xf32, #tpu.memory_space<vmem>>, vector<1x1x4x1xf32>,
      %cst_52 = arith.constant 0.000000e+00 : f32
      %89 = vector.broadcast %cst_52 : f32 to vector<4x1xf32>
      %c0_53 = arith.constant 0 : index
      %c0_54 = arith.constant 0 : index
      %c0_55 = arith.constant 0 : index
      %c0_56 = arith.constant 0 : index
      %90 = vector.load %arg8[%c0_53, %c0_54, %c0_55, %c0_56] : memref<1x1x4x1xf32, #tpu.memory_space<vmem>>, vector<1x1x4x1xf32>
      %91 = vector.shape_cast %90 : vector<1x1x4x1xf32> to vector<4x1xf32>
      %92 = vector.shape_cast %89 : vector<4x1xf32> to vector<1x1x4x1xf32>
      tpu.vector_store %arg8[%c0_53, %c0_54, %c0_55, %c0_56], %92 {strides = array<i32>} : memref<1x1x4x1xf32, #tpu.memory_space<vmem>>, vector<1x1x4x1xf32>,
    } else {
    }
    %c1_i32 = arith.constant 1 : i32
    %3 = arith.muli %arg1, %c1_i32 : i32
    %4 = arith.addi %3, %arg2 : i32
    %c256_i32 = arith.constant 256 : i32
    %5 = arith.muli %4, %c256_i32 : i32
    %6 = tpu.iota {dimensions = array<i32: 0>} : vector<4x256xi32>
    %7 = tpu.iota {dimensions = array<i32: 1>} : vector<1x256xi32>
    %c0 = arith.constant 0 : index
    %c0_1 = arith.constant 0 : index
    %8 = vector.load %arg5[%c0, %c0_1] : memref<256x128xbf16, #tpu.memory_space<vmem>>, vector<256x128xbf16>
    %cst = arith.constant 0.000000e+00 : f32
    %9 = vector.broadcast %cst : f32 to vector<4x1xf32>
    %c0_i32_2 = arith.constant 0 : i32
    %c256_i32_3 = arith.constant 256 : i32
    %10 = arith.muli %c0_i32_2, %c256_i32_3 : i32
    %11 = tpu.assume_multiple %10, 256 : i32
    %c0_4 = arith.constant 0 : index
    %c0_5 = arith.constant 0 : index
    %12 = arith.index_cast %11 : i32 to index
    %13 = vector.load %arg3[%c0_4, %c0_5, %12] : memref<1x4x256xf32, #tpu.memory_space<vmem>>, vector<1x4x256xf32>
    %14 = vector.shape_cast %13 : vector<1x4x256xf32> to vector<4x256xf32>
    %c0_6 = arith.constant 0 : index
    %c0_7 = arith.constant 0 : index
    %15 = arith.index_cast %11 : i32 to index
    %16 = vector.load %arg4[%c0_6, %c0_7, %15] : memref<1x1x256xi8, #tpu.memory_space<vmem>>, vector<1x1x256xi8>
    %17 = vector.shape_cast %16 : vector<1x1x256xi8> to vector<1x256xi8>
    %18 = arith.extsi %17 : vector<1x256xi8> to vector<1x256xi32>
    %cst_8 = arith.constant dense<0xFF800000> : vector<256xf32>
    %19 = vector.multi_reduction <maximumf>, %14, %cst_8 [0] : vector<4x256xf32> to vector<256xf32>
    %20 = vector.shape_cast %19 : vector<256xf32> to vector<1x256xf32>
    %21 = vector.broadcast %20 : vector<1x256xf32> to vector<4x256xf32>
    %22 = arith.cmpf oeq, %14, %21 : vector<4x256xf32>
    %c4_i32 = arith.constant 4 : i32
    %23 = vector.broadcast %c4_i32 : i32 to vector<4x256xi32>
    %24 = arith.select %22, %6, %23 : vector<4x256xi1>, vector<4x256xi32>
    %cst_9 = arith.constant dense<2147483647> : vector<256xi32>
    %25 = vector.multi_reduction <minsi>, %24, %cst_9 [0] : vector<4x256xi32> to vector<256xi32>
    %26 = vector.shape_cast %25 : vector<256xi32> to vector<1x256xi32>
    %27 = arith.addi %5, %11 : i32
    %28 = vector.broadcast %27 : i32 to vector<1x256xi32>
    %29 = arith.addi %28, %7 : vector<1x256xi32>
    %c256_i32_10 = arith.constant 256 : i32
    %30 = vector.broadcast %c256_i32_10 : i32 to vector<1x256xi32>
    %31 = arith.cmpi slt, %29, %30 : vector<1x256xi32>
    %c4_i32_11 = arith.constant 4 : i32
    %32 = vector.broadcast %c4_i32_11 : i32 to vector<1x256xi32>
    %33 = arith.select %31, %26, %32 : vector<1x256xi1>, vector<1x256xi32>
    %c4_i32_12 = arith.constant 4 : i32
    %34 = vector.broadcast %c4_i32_12 : i32 to vector<1x256xi32>
    %35 = arith.select %31, %18, %34 : vector<1x256xi1>, vector<1x256xi32>
    %36 = arith.cmpi eq, %33, %35 : vector<1x256xi32>
    %c4_i32_13 = arith.constant 4 : i32
    %37 = vector.broadcast %c4_i32_13 : i32 to vector<1x256xi32>
    %38 = arith.select %36, %35, %37 : vector<1x256xi1>, vector<1x256xi32>
    %39 = vector.broadcast %33 : vector<1x256xi32> to vector<4x256xi32>
    %40 = arith.cmpi eq, %6, %39 : vector<4x256xi32>
    %41 = arith.extui %40 : vector<4x256xi1> to vector<4x256xi32>
    %42 = arith.sitofp %41 : vector<4x256xi32> to vector<4x256xf32>
    %43 = arith.truncf %42 : vector<4x256xf32> to vector<4x256xbf16>
    %44 = vector.broadcast %35 : vector<1x256xi32> to vector<4x256xi32>
    %45 = arith.cmpi eq, %6, %44 : vector<4x256xi32>
    %46 = arith.extui %45 : vector<4x256xi1> to vector<4x256xi32>
    %47 = arith.sitofp %46 : vector<4x256xi32> to vector<4x256xf32>
    %48 = arith.truncf %47 : vector<4x256xf32> to vector<4x256xbf16>
    %49 = vector.broadcast %38 : vector<1x256xi32> to vector<4x256xi32>
    %50 = arith.cmpi eq, %6, %49 : vector<4x256xi32>
    %51 = arith.extui %50 : vector<4x256xi1> to vector<4x256xi32>
    %52 = arith.sitofp %51 : vector<4x256xi32> to vector<4x256xf32>
    %53 = arith.truncf %52 : vector<4x256xf32> to vector<4x256xbf16>
    %cst_14 = arith.constant dense<0.000000e+00> : vector<4x128xf32>
    %54 = tpu.matmul %43, %8, %cst_14 {dimension_numbers = #tpu.dot_dimension_numbers<[1], [0], [0], [1], [0, 0, 1, 1], [], []>} : vector<4x256xbf16>, vector<256x128xbf16>, vector<4x128xf32> -> vector<4x128xf32>
    %55 = vector.extract_strided_slice %54 {offsets = [0, 0], sizes = [4, 1], strides = [1, 1]} : vector<4x128xf32> to vector<4x1xf32>
    %56 = arith.addf %9, %55 : vector<4x1xf32>
    %cst_15 = arith.constant dense<0.000000e+00> : vector<4x128xf32>
    %57 = tpu.matmul %48, %8, %cst_15 {dimension_numbers = #tpu.dot_dimension_numbers<[1], [0], [0], [1], [0, 0, 1, 1], [], []>} : vector<4x256xbf16>, vector<256x128xbf16>, vector<4x128xf32> -> vector<4x128xf32>
    %58 = vector.extract_strided_slice %57 {offsets = [0, 0], sizes = [4, 1], strides = [1, 1]} : vector<4x128xf32> to vector<4x1xf32>
    %59 = arith.addf %9, %58 : vector<4x1xf32>
    %cst_16 = arith.constant dense<0.000000e+00> : vector<4x128xf32>
    %60 = tpu.matmul %53, %8, %cst_16 {dimension_numbers = #tpu.dot_dimension_numbers<[1], [0], [0], [1], [0, 0, 1, 1], [], []>} : vector<4x256xbf16>, vector<256x128xbf16>, vector<4x128xf32> -> vector<4x128xf32>
    %61 = vector.extract_strided_slice %60 {offsets = [0, 0], sizes = [4, 1], strides = [1, 1]} : vector<4x128xf32> to vector<4x1xf32>
    %62 = arith.addf %9, %61 : vector<4x1xf32>
    %c1_i32_17 = arith.constant 1 : i32
    %c0_18 = arith.constant 0 : index
    %c0_19 = arith.constant 0 : index
    %c0_20 = arith.constant 0 : index
    %c0_21 = arith.constant 0 : index
    %63 = vector.load %arg6[%c0_18, %c0_19, %c0_20, %c0_21] : memref<1x1x4x1xf32, #tpu.memory_space<vmem>>, vector<1x1x4x1xf32>
    %64 = vector.shape_cast %63 : vector<1x1x4x1xf32> to vector<4x1xf32>
    %65 = arith.addf %64, %62 : vector<4x1xf32>
    %c0_22 = arith.constant 0 : index
    %c0_23 = arith.constant 0 : index
    %c0_24 = arith.constant 0 : index
    %c0_25 = arith.constant 0 : index
    %66 = vector.load %arg6[%c0_22, %c0_23, %c0_24, %c0_25] : memref<1x1x4x1xf32, #tpu.memory_space<vmem>>, vector<1x1x4x1xf32>
    %67 = vector.shape_cast %66 : vector<1x1x4x1xf32> to vector<4x1xf32>
    %68 = vector.shape_cast %65 : vector<4x1xf32> to vector<1x1x4x1xf32>
    tpu.vector_store %arg6[%c0_22, %c0_23, %c0_24, %c0_25], %68 {strides = array<i32>} : memref<1x1x4x1xf32, #tpu.memory_space<vmem>>, vector<1x1x4x1xf32>,
    %c0_26 = arith.constant 0 : index
    %c0_27 = arith.constant 0 : index
    %c0_28 = arith.constant 0 : index
    %c0_29 = arith.constant 0 : index
    %69 = vector.load %arg7[%c0_26, %c0_27, %c0_28, %c0_29] : memref<1x1x4x1xf32, #tpu.memory_space<vmem>>, vector<1x1x4x1xf32>
    %70 = vector.shape_cast %69 : vector<1x1x4x1xf32> to vector<4x1xf32>
    %71 = arith.addf %70, %56 : vector<4x1xf32>
    %c0_30 = arith.constant 0 : index
    %c0_31 = arith.constant 0 : index
    %c0_32 = arith.constant 0 : index
    %c0_33 = arith.constant 0 : index
    %72 = vector.load %arg7[%c0_30, %c0_31, %c0_32, %c0_33] : memref<1x1x4x1xf32, #tpu.memory_space<vmem>>, vector<1x1x4x1xf32>
    %73 = vector.shape_cast %72 : vector<1x1x4x1xf32> to vector<4x1xf32>
    %74 = vector.shape_cast %71 : vector<4x1xf32> to vector<1x1x4x1xf32>
    tpu.vector_store %arg7[%c0_30, %c0_31, %c0_32, %c0_33], %74 {strides = array<i32>} : memref<1x1x4x1xf32, #tpu.memory_space<vmem>>, vector<1x1x4x1xf32>,
    %c0_34 = arith.constant 0 : index
    %c0_35 = arith.constant 0 : index
    %c0_36 = arith.constant 0 : index
    %c0_37 = arith.constant 0 : index
    %75 = vector.load %arg8[%c0_34, %c0_35, %c0_36, %c0_37] : memref<1x1x4x1xf32, #tpu.memory_space<vmem>>, vector<1x1x4x1xf32>
    %76 = vector.shape_cast %75 : vector<1x1x4x1xf32> to vector<4x1xf32>
    %77 = arith.addf %76, %59 : vector<4x1xf32>
    %c0_38 = arith.constant 0 : index
    %c0_39 = arith.constant 0 : index
    %c0_40 = arith.constant 0 : index
    %c0_41 = arith.constant 0 : index
    %78 = vector.load %arg8[%c0_38, %c0_39, %c0_40, %c0_41] : memref<1x1x4x1xf32, #tpu.memory_space<vmem>>, vector<1x1x4x1xf32>
    %79 = vector.shape_cast %78 : vector<1x1x4x1xf32> to vector<4x1xf32>
    %80 = vector.shape_cast %77 : vector<4x1xf32> to vector<1x1x4x1xf32>
    tpu.vector_store %arg8[%c0_38, %c0_39, %c0_40, %c0_41], %80 {strides = array<i32>} : memref<1x1x4x1xf32, #tpu.memory_space<vmem>>, vector<1x1x4x1xf32>,
    return
  }
  func.func @transform_0(%arg0: i32, %arg1: i32, %arg2: i32) -> (i32, i32, i32) {
    %c1_i32 = arith.constant 1 : i32
    %0 = arith.muli %arg1, %c1_i32 : i32
    %1 = arith.addi %0, %arg2 : i32
    %c0_i32 = arith.constant 0 : i32
    %2 = arith.minsi %1, %c0_i32 : i32
    %c0_i32_0 = arith.constant 0 : i32
    %c0_i32_1 = arith.constant 0 : i32
    return %arg0, %c0_i32_0, %2 : i32, i32, i32
  }
  func.func @transform_1(%arg0: i32, %arg1: i32, %arg2: i32) -> (i32, i32, i32) {
    %c1_i32 = arith.constant 1 : i32
    %0 = arith.muli %arg1, %c1_i32 : i32
    %1 = arith.addi %0, %arg2 : i32
    %c0_i32 = arith.constant 0 : i32
    %2 = arith.minsi %1, %c0_i32 : i32
    %c0_i32_0 = arith.constant 0 : i32
    %c0_i32_1 = arith.constant 0 : i32
    return %arg0, %c0_i32_0, %2 : i32, i32, i32
  }
  func.func @transform_2(%arg0: i32, %arg1: i32, %arg2: i32) -> (i32, i32) {
    %c0_i32 = arith.constant 0 : i32
    %c0_i32_0 = arith.constant 0 : i32
    %c0_i32_1 = arith.constant 0 : i32
    return %c0_i32, %c0_i32_0 : i32, i32
  }
  func.func @transform_3(%arg0: i32, %arg1: i32, %arg2: i32) -> (i32, i32, i32, i32) {
    %c0_i32 = arith.constant 0 : i32
    %c0_i32_0 = arith.constant 0 : i32
    %c0_i32_1 = arith.constant 0 : i32
    return %arg0, %arg1, %c0_i32, %c0_i32_0 : i32, i32, i32, i32
  }
  func.func @transform_4(%arg0: i32, %arg1: i32, %arg2: i32) -> (i32, i32, i32, i32) {
    %c0_i32 = arith.constant 0 : i32
    %c0_i32_0 = arith.constant 0 : i32
    %c0_i32_1 = arith.constant 0 : i32
    return %arg0, %arg1, %c0_i32, %c0_i32_0 : i32, i32, i32, i32
  }
  func.func @transform_5(%arg0: i32, %arg1: i32, %arg2: i32) -> (i32, i32, i32, i32) {
    %c0_i32 = arith.constant 0 : i32
    %c0_i32_0 = arith.constant 0 : i32
    %c0_i32_1 = arith.constant 0 : i32
    return %arg0, %arg1, %c0_i32, %c0_i32_0 : i32, i32, i32, i32
  }
}

</mosaic_0001>

<bundles_post_ra>
// kernel: tpu_custom_call.1
= control target key start
LH: loop header
LB: loop body
LE: loop exit
PB: predicated region body
PF: predicated region fallthrough
CT: control target
= control target key end

     0   :  { %11 = vsyncpa [#allocation3], 0  ;;  %s1514_s0 = inlined_call_operand.hbm [shape: f32[2,4,256], index: 0, kind: input, shape index: {}]   ;;  %s1515_s1 = inlined_call_operand.vmem [shape: s8[2,1,256], index: 1, kind: input, shape index: {}]   ;;  %s1516_s2 = inlined_call_operand.hbm [shape: bf16[256,128], index: 2, kind: input, shape index: {}]   ;;  %s1517_s3 = inlined_call_operand.vmem [shape: f32[2,1,4,1], index: 3, kind: output, shape index: {0}]   ;;  %s1518_s4 = inlined_call_operand.vmem [shape: f32[2,1,4,1], index: 4, kind: output, shape index: {1}]   ;;  %s1519_s5 = inlined_call_operand.vmem [shape: f32[2,1,4,1], index: 5, kind: output, shape index: {2}]  }
   0x1   :  { %13 = vsyncpa [#allocation3 + $0x1], 0 }
   0x2   :  { %14 = vsyncpa [#allocation5], 0  ;;  %s1266_s18 = smov 0   ;;  %s1268_s19 = smov 0  }
   0x3   :  { %s1270_s20 = smov 0   ;;  %s1272_s21 = smov 0  }
   0x4   :  { %s1274_s22 = smov 0   ;;  %s1276_s23 = smov 0  }
   0x5 LB: > { %s927_s24 = sadd.s32 4294967295, %s1228_s23   ;;  %p929_p0 = scmp.ge.s32.totalorder %s1228_s23, 1  ;;  %s1228_s23 = sphi %s1276_s23, %s20_s23   ;;  %s1224_s22 = sphi %s1274_s22, %s1530_s22   ;;  %s1220_s21 = sphi %s1272_s21, %s1529_s21   ;;  %s1216_s20 = sphi %s1270_s20, %s1528_s20   ;;  %s1212_s19 = sphi %s1268_s19, %s1527_s19   ;;  %s1208_s18 = sphi %s1266_s18, %s1526_s18  }
   0x6   : > { %p1298_p1 = scmp.eq.s32.totalorder %s927_s24, 0  ;;  %p217_p2 = scmp.lt.s32.totalorder %s1228_s23, 3 }
   0x7   : > { %s228_s28 = sshll.u32 %s1516_s2, 4  ;;  %s1230_s30 = smov [#allocation4]   ;;  %s229_s28 = int_to_ptr.hbm [resolvable:$true] %s228_s28 }
   0x8   : > { %p1306_p3 = pnand %p929_p0, %p217_p2  ;;  %s230_s6 = sshll.u32 %s1230_s30, 4  ;;  %s231_s6 = int_to_ptr.vmem [resolvable:$true] %s230_s6 }
   0x9   : > { %s1231_s7 = smov 64   ;;  %s1232_s8 = smov 4  }
   0xa   : > { %p1049_p4 = pneg %p1306_p3  ;;  %s39_s9 = sadd.s32 1, %s1224_s22 }
   0xb   : > { %p41_p6 = scmp.ge.s32.totalorder %s39_s9, 2  ;;  %p61_p7 = scmp.ne.s32.totalorder %s1216_s20, %s1212_s19 }
   0xc   : > { %p1050_p5 = pnand %p1049_p4, %p1298_p1  ;;  %p62_p8 = scmp.eq.s32.totalorder %s1228_s23, 0 }
   0xd   : > { %s1532_s9 = smov (%p41_p6, %s39_s9), 0  ;;  %s54_s10 = sadd.s32 1, %s1216_s20 }
   0xe   : > { %1052 = dma.hbm_to_vmem [thread:$0]  (!%p1050_p5), %s229_s28, 2048, %s231_s6, [#allocation5], %s1231_s7, %s1231_s7, %s1232_s8  }
   0xf   : > { %p67_p9 = scmp.ne.s32.totalorder %s1212_s19, %s1208_s18  ;;  %s49_s11 = ssub.s32 %s1224_s22, %s1532_s9 }
  0x10   : > { %p1325_p10 = por %p62_p8, %p61_p7  ;;  %p52_p11 = scmp.eq.s32.totalorder %s49_s11, 0 }
  0x11   : > { %p1331_p12 = por %p1298_p1, %p67_p9  ;;  %s244_s14 = sand.u32 1, %s1216_s20  }
  0x12   : > { %s1026_s15 = sshll.u32 %s1224_s22, 3  ;;  %p1058_p13 = scmp.lt.s32.totalorder %s1228_s23, 2 }
  0x13   : > { %s1338_s16 = scalar_select %p52_p11, %s1216_s20, %s54_s10  }
  0x14   : > { %s932_s17 = sshll.u32 %s244_s14, 3  ;;  %s258_s26 = scalar_lea.hbm %s1514_s0, %s1026_s15 }
  0x15   : > { %s260_s27 = sshll.u32 %s258_s26, 4  ;;  %s248_s28 = scalar_lea.vmem [#allocation2], %s932_s17  ;;  %s261_s27 = int_to_ptr.hbm [resolvable:$true] %s260_s27 }
  0x16   : > { %s262_s30 = sshll.u32 %s248_s28, 4  ;;  %p1054_p0 = pnand %p1058_p13, %p1325_p10  ;;  %s263_s30 = int_to_ptr.vmem [resolvable:$true] %s262_s30 }
  0x17   : > { %s245_s6 = scalar_lea.sflag [#allocation3], %s244_s14  ;;  %289 = sbr.rel (%p1306_p3) target bundleno = 234 (0xea), region = 32 }
  0x18   : > { %1056 = dma.hbm_to_vmem [thread:$0]  (!%p1054_p0), %s261_s27, 128, %s263_s30, %s245_s6  }
  0x19   : > { %s291_s7 = sand.u32 (!%p1306_p3), 1, %s1212_s19  }
  0x1a   : > { %s936_s8 = sshll.u32 (!%p1306_p3), %s291_s7, 3  ;;  %s292_s10 = scalar_lea.sflag (!%p1306_p3), [#allocation3], %s291_s7 }
  0x1b   : > { %s295_s11 = scalar_lea.vmem (!%p1306_p3), [#allocation2], %s936_s8 }
  0x1c   : > { %1199 = dma.done.wait (%p1331_p12), %s292_s10, 128  }
  0x1d   : > { %1201 = vsyncadd (%p1331_p12), %s292_s10, 4294967168 }
  0x1e   : > { %1203 = dma.done.wait (%p1298_p1), [#allocation5], 2048  }
  0x1f   : > { %1205 = vsyncadd (%p1298_p1), [#allocation5], 4294965248  ;;  %v1357_v0 = vld [vmem:[#allocation4 + $0x38] sm:$0xff]  ;;  %p363_p2 = scmp.lt.s32.totalorder %s1220_s21, 1  ;;  %v1364_v2 = vld [vmem:[#allocation4 + $0x30] sm:$0xff]  ;;  %vm451_vm0 = vcmask 1043456   ;;  %v405_v23 = vlaneseq }
  0x20   : > { %v1359_v1 = vld [vmem:[#allocation4 + $0x78] sm:$0xff]  ;;  %640 = vmatpush.bf16.msra.mxu0 %v1357_v0  ;;  %v1366_v3 = vld [vmem:[#allocation4 + $0x70] sm:$0xff]  ;;  %667 = vmatpush.bf16.msra.mxu2 %v1357_v0  ;;  %v1377_v5 = vld [vmem:[#allocation4 + $0x28] sm:$0xff]  ;;  %v1233_v26 = vmov 839922192  }
  0x21   : > { %653 = vmatpush.bf16.msra.mxu1 %v1359_v1  ;;  %680 = vmatpush.bf16.msra.mxu3 %v1359_v1  ;;  %s1534_s21 = smov (!%p363_p2, %s1220_s21), 1  ;;  %v1373_v4 = vld [vmem:[%s295_s11] sm:$0xff]  ;;  %v1379_v6 = vld [vmem:[#allocation4 + $0x68] sm:$0xff]  ;;  %v1387_v7 = vld [vmem:[#allocation4 + $0x20] sm:$0xff]  ;;  %v473_v27 = vunpack.c.l.s4 %v1233_v26  ;;  %v1426_v34 = vshrl.u32 %v405_v23, 7 }
  0x22   : > { %446 = vst [vmem:[#allocation1] ss:$2 sm:$0xff] %v1373_v4  ;;  %s938_s25 = sshll.u32 %s1534_s21, 1  ;;  %v1389_v8 = vld [vmem:[#allocation4 + $0x60] sm:$0xff]  ;;  %v1398_v11 = vld [vmem:[#allocation4 + $0x18] sm:$0xff]  ;;  %v1408_v21 = vld [vmem:[#allocation4 + $0x10] sm:$0xff] }
  0x23   : > { %s369_s13 = scalar_lea.vmem %s1515_s1, %s938_s25  ;;  %v1400_v12 = vld [vmem:[#allocation4 + $0x58] sm:$0xff]  ;;  %v1410_v22 = vld [vmem:[#allocation4 + $0x50] sm:$0xff]  ;;  %v1418_v31 = vld [vmem:[#allocation4 + $0x8] sm:$0xff]  ;;  %v474_v37 = vunpack.c.0.s8 %v473_v27  ;;  %v1234_v49 = vmov 1.0|1.0   ;;  %s939_s14 = sshll.u32 %s1534_s21, 2 }
  0x24   : > { %641 = vmatpush.bf16.msra.mxu0 %v1364_v2  ;;  %668 = vmatpush.bf16.msra.mxu2 %v1364_v2  ;;  %v443_v13 = vld [vmem:[%s369_s13] sm:$0x3]  ;;  %v1431_v41 = vld [vmem:[#allocation4] sm:$0xff]  ;;  %s387_s24 = scalar_lea.vmem %s1518_s4, %s939_s14  ;;  %s394_s27 = scalar_lea.vmem %s1519_s5, %s939_s14 }
  0x25   : > { %654 = vmatpush.bf16.msra.mxu1 %v1366_v3  ;;  %681 = vmatpush.bf16.msra.mxu3 %v1366_v3  ;;  %v444_v18 = vunpack.c.0.s8 %v443_v13  ;;  %v1420_v32 = vld [vmem:[#allocation4 + $0x48] sm:$0xff]  ;;  %v1433_v42 = vld [vmem:[#allocation4 + $0x40] sm:$0xff]  ;;  %v475_v45 = vperm.slane %v1426_v34, %v474_v37  ;;  %s380_s6 = scalar_lea.vmem %s1517_s3, %s939_s14 }
  0x27   : > { %v1414_v30 = vperm.slane %v444_v18, 0  ;;  %v1422_v33 = vperm.slane %v444_v18, 4 }
  0x28   : > { %642 = vmatpush.bf16.msra.mxu0 %v1377_v5  ;;  %669 = vmatpush.bf16.msra.mxu2 %v1377_v5 }
  0x29   : > { %655 = vmatpush.bf16.msra.mxu1 %v1379_v6  ;;  %682 = vmatpush.bf16.msra.mxu3 %v1379_v6  ;;  %v447_v9 = vld.sshfl [vmem:[#allocation1] sm:$0xff pattern:$0x75316420]  ;;  %v448_v10 = vld.sshfl [vmem:[#allocation1 + $0x8] sm:$0xff pattern:$0x75316420] }
  0x2a   : > { %v452_v14 = vsel %vm451_vm0, %v447_v9, -inf  ;;  %v459_v15 = vsel %vm451_vm0, %v448_v10, -inf  ;;  %v524_v40 = vperm.slane %v1414_v30, 0  ;;  %v525_v43 = vperm.slane %v1422_v33, 0 }
  0x2b   : > { %v453_v16 = vrot.slane %v452_v14, 4  ;;  %v460_v17 = vrot.slane %v459_v15, 4 }
  0x2c   : > { %643 = vmatpush.bf16.msra.mxu0 %v1387_v7  ;;  %670 = vmatpush.bf16.msra.mxu2 %v1387_v7  ;;  %vm1441_vm1 = vcmp.eq.s32.totalorder %v1426_v34, %v524_v40  ;;  %vm527_vm3 = vcmp.eq.s32.totalorder %v1426_v34, %v525_v43 }
  0x2d   : > { %656 = vmatpush.bf16.msra.mxu1 %v1389_v8  ;;  %683 = vmatpush.bf16.msra.mxu3 %v1389_v8  ;;  %v454_v19 = vmax.f32 %v452_v14, %v453_v16  ;;  %v461_v20 = vmax.f32 %v459_v15, %v460_v17  ;;  %vm1016_vm4 = vmpackc.low %vm1441_vm1, %vm1441_vm1 }
  0x2e   : > { %vm1018_vm5 = vmpackc.low %vm527_vm3, %vm527_vm3 }
  0x2f   : > { %v455_v24 = vrot.slane %v454_v19, 2  ;;  %v462_v25 = vrot.slane %v461_v20, 2 }
  0x30   : > { %644 = vmatpush.bf16.msra.mxu0 %v1398_v11  ;;  %671 = vmatpush.bf16.msra.mxu2 %v1398_v11 }
  0x31   : > { %657 = vmatpush.bf16.msra.mxu1 %v1400_v12  ;;  %684 = vmatpush.bf16.msra.mxu3 %v1400_v12  ;;  %v456_v28 = vmax.f32 %v454_v19, %v455_v24  ;;  %v463_v29 = vmax.f32 %v461_v20, %v462_v25 }
  0x33   : > { %v457_v35 = vrot.slane %v456_v28, 1  ;;  %v464_v36 = vrot.slane %v463_v29, 1 }
  0x34   : > { %645 = vmatpush.bf16.msra.mxu0 %v1408_v21  ;;  %672 = vmatpush.bf16.msra.mxu2 %v1408_v21 }
  0x35   : > { %658 = vmatpush.bf16.msra.mxu1 %v1410_v22  ;;  %685 = vmatpush.bf16.msra.mxu3 %v1410_v22  ;;  %v458_v38 = vmax.f32 %v456_v28, %v457_v35  ;;  %v465_v39 = vmax.f32 %v463_v29, %v464_v36 }
  0x37   : > { %v468_v44 = vrot.slane %v465_v39, 4 }
  0x38   : > { %646 = vmatpush.bf16.msra.mxu0 %v1418_v31  ;;  %673 = vmatpush.bf16.msra.mxu2 %v1418_v31 }
  0x39   : > { %659 = vmatpush.bf16.msra.mxu1 %v1420_v32  ;;  %686 = vmatpush.bf16.msra.mxu3 %v1420_v32  ;;  %v469_v46 = vsel %vm451_vm0, %v458_v38, %v468_v44 }
  0x3a   : > { %vm471_vm2 = vcmp.eq.f32.partialorder %v1373_v4, %v469_v46 }
  0x3b   : > { %v476_v48 = vsel %vm471_vm2, %v475_v45, 4 }
  0x3c   : > { %647 = vmatpush.bf16.msra.mxu0 %v1431_v41  ;;  %674 = vmatpush.bf16.msra.mxu2 %v1431_v41  ;;  %477 = vst [vmem:[#allocation1] ss:$2 sm:$0xff] %v476_v48 }
  0x3d   : > { %660 = vmatpush.bf16.msra.mxu1 %v1433_v42  ;;  %687 = vmatpush.bf16.msra.mxu3 %v1433_v42 }
  0x3f   : > { %1017 = vmatmul.msk.bf16.vlgmr.msra.gmra.mxu2 %vm1016_vm4, %v1234_v49 }
  0x40   : > { %694 = vmatpush.bf16.msrb.mxu0 %v1357_v0  ;;  %1019 = vmatmul.msk.bf16.vlgmr.msra.gmra.mxu3 %vm1018_vm5, %v1234_v49 }
  0x41   : > { %707 = vmatpush.bf16.msrb.mxu1 %v1359_v1 }
  0x43   : > { %v478_v50 = vld.sshfl [vmem:[#allocation1] sm:$0xff pattern:$0x75316420]  ;;  %v479_v51 = vld.sshfl [vmem:[#allocation1 + $0x8] sm:$0xff pattern:$0x75316420] }
  0x44   : > { %695 = vmatpush.bf16.msrb.mxu0 %v1364_v2  ;;  %v480_v52 = vsel %vm451_vm0, %v478_v50, 2147483647  ;;  %v490_v53 = vsel %vm451_vm0, %v479_v51, 2147483647 }
  0x45   : > { %708 = vmatpush.bf16.msrb.mxu1 %v1366_v3  ;;  %v481_v54 = vrot.slane %v480_v52, 4  ;;  %v491_v55 = vrot.slane %v490_v53, 4 }
  0x47   : > { %vm482_vm6 = vcmp.lt.s32.totalorder %v480_v52, %v481_v54  ;;  %vm492_vm7 = vcmp.lt.s32.totalorder %v490_v53, %v491_v55 }
  0x48   : > { %696 = vmatpush.bf16.msrb.mxu0 %v1377_v5  ;;  %v483_v56 = vsel %vm482_vm6, %v480_v52, %v481_v54  ;;  %v493_v57 = vsel %vm492_vm7, %v490_v53, %v491_v55  ;;  %vm399_vm6 = vcmask 3072  }
  0x49   : > { %709 = vmatpush.bf16.msrb.mxu1 %v1379_v6  ;;  %v484_v58 = vrot.slane %v483_v56, 2  ;;  %v494_v59 = vrot.slane %v493_v57, 2  ;;  %v1235_v6 = vmov 0.0  }
  0x4a   : > { %401 = vst.msk [vmem:[%s387_s24] sm:$0xf] %vm399_vm6, %v1235_v6 }
  0x4b   : > { %vm485_vm8 = vcmp.lt.s32.totalorder %v483_v56, %v484_v58  ;;  %vm495_vm9 = vcmp.lt.s32.totalorder %v493_v57, %v494_v59  ;;  %402 = vst.msk [vmem:[%s394_s27] sm:$0xf] %vm399_vm6, %v1235_v6 }
  0x4c   : > { %697 = vmatpush.bf16.msrb.mxu0 %v1387_v7  ;;  %v486_v60 = vsel %vm485_vm8, %v483_v56, %v484_v58  ;;  %v496_v61 = vsel %vm495_vm9, %v493_v57, %v494_v59  ;;  %400 = vst.msk [vmem:[%s380_s6] sm:$0xf] %vm399_vm6, %v1235_v6 }
  0x4d   : > { %710 = vmatpush.bf16.msrb.mxu1 %v1389_v8  ;;  %v487_v62 = vrot.slane %v486_v60, 1  ;;  %v497_v63 = vrot.slane %v496_v61, 1 }
  0x4f   : > { %vm488_vm10 = vcmp.lt.s32.totalorder %v486_v60, %v487_v62  ;;  %vm498_vm11 = vcmp.lt.s32.totalorder %v496_v61, %v497_v63 }
  0x50   : > { %698 = vmatpush.bf16.msrb.mxu0 %v1398_v11  ;;  %v489_v0 = vsel %vm488_vm10, %v486_v60, %v487_v62  ;;  %v499_v1 = vsel %vm498_vm11, %v496_v61, %v497_v63 }
  0x51   : > { %711 = vmatpush.bf16.msrb.mxu1 %v1400_v12  ;;  %vm516_vm12 = vcmp.eq.s32.totalorder %v1426_v34, %v489_v0  ;;  %vm517_vm13 = vcmp.eq.s32.totalorder %v1426_v34, %v499_v1  ;;  %vm512_vm15 = vcmp.eq.s32.totalorder %v489_v0, %v1414_v30  ;;  %vm513_vm1 = vcmp.eq.s32.totalorder %v499_v1, %v1422_v33  ;;  %v725_v16 = vld [vmem:[%s387_s24] sm:$0xf] }
  0x52   : > { %vm1012_vm14 = vmpackc.low %vm516_vm12, %vm516_vm12  ;;  %v514_v2 = vsel %vm512_vm15, %v1414_v30, 4  ;;  %v515_v3 = vsel %vm513_vm1, %v1422_v33, 4  ;;  %v728_v9 = vld [vmem:[%s394_s27] sm:$0xf] }
  0x53   : > { %1013 = vmatmul.msk.bf16.vlgmr.msra.gmra.mxu0 %vm1012_vm14, %v1234_v49  ;;  %vm1014_vm0 = vmpackc.low %vm517_vm13, %vm517_vm13  ;;  %v534_v4 = vperm.slane %v514_v2, 0  ;;  %v535_v5 = vperm.slane %v515_v3, 0  ;;  %v721_v23 = vld [vmem:[%s380_s6] sm:$0xf] }
  0x54   : > { %699 = vmatpush.bf16.msrb.mxu0 %v1408_v21  ;;  %1015 = vmatmul.msk.bf16.vlgmr.msra.gmra.mxu1 %vm1014_vm0, %v1234_v49 }
  0x55   : > { %712 = vmatpush.bf16.msrb.mxu1 %v1410_v22  ;;  %vm536_vm2 = vcmp.eq.s32.totalorder %v1426_v34, %v534_v4  ;;  %vm537_vm3 = vcmp.eq.s32.totalorder %v1426_v34, %v535_v5 }
  0x56   : > { %vm1020_vm4 = vmpackc.low %vm536_vm2, %vm536_vm2 }
  0x57   : > { %vm1022_vm5 = vmpackc.low %vm537_vm3, %vm537_vm3 }
  0x58   : > { %700 = vmatpush.bf16.msrb.mxu0 %v1418_v31 }
  0x59   : > { %713 = vmatpush.bf16.msrb.mxu1 %v1420_v32 }
  0x5c   : > { %701 = vmatpush.bf16.msrb.mxu0 %v1431_v41 }
  0x5d   : > { %714 = vmatpush.bf16.msrb.mxu1 %v1433_v42 }
  0x63   : > { %1021 = vmatmul.msk.bf16.vlgmr.msrb.gmra.mxu0 %vm1020_vm4, %v1234_v49 }
  0x64   : > { %1023 = vmatmul.msk.bf16.vlgmr.msrb.gmra.mxu1 %vm1022_vm5, %v1234_v49 }
  0xc2   : > { %v676_v7 = vpop.f32.mrf.mxu2 }
  0xc3   : > { %v689_v8 = vpop.f32.mrf.mxu3 }
  0xc4   : > { %v690_v10 = vadd.f32 %v689_v8, %v676_v7 }
  0xc6   : > { %v729_v11 = vadd.f32 %v728_v9, %v690_v10 }
  0xc8   : > { %730 = vst.msk [vmem:[%s394_s27] sm:$0xf] %vm399_vm6, %v729_v11 }
  0xca   : > { %v678_v12 = vpop.f32.mrf.mxu2 }
  0xcb   : > { %v691_v13 = vpop.f32.mrf.mxu3 }
  0xd0   : > { %v649_v14 = vpop.f32.mrf.mxu0 }
  0xd1   : > { %v662_v15 = vpop.f32.mrf.mxu1 }
  0xd2   : > { %v663_v17 = vadd.f32 %v662_v15, %v649_v14 }
  0xd4   : > { %v726_v18 = vadd.f32 %v725_v16, %v663_v17 }
  0xd6   : > { %727 = vst.msk [vmem:[%s387_s24] sm:$0xf] %vm399_vm6, %v726_v18 }
  0xd8   : > { %v651_v19 = vpop.f32.mrf.mxu0 }
  0xd9   : > { %v664_v20 = vpop.f32.mrf.mxu1 }
  0xe0   : > { %v703_v21 = vpop.f32.mrf.mxu0 }
  0xe1   : > { %v716_v22 = vpop.f32.mrf.mxu1 }
  0xe2   : > { %v717_v24 = vadd.f32 %v716_v22, %v703_v21 }
  0xe4   : > { %v722_v25 = vadd.f32 %v721_v23, %v717_v24 }
  0xe6   : > { %724 = vst.msk [vmem:[%s380_s6] sm:$0xf] %vm399_vm6, %v722_v25 }
  0xe8   : > { %v705_v26 = vpop.f32.mrf.mxu0 }
  0xe9   : > { %v718_v27 = vpop.f32.mrf.mxu1 }
  0xea PF: > { %s20_s23 = sadd.s32 1, %s1228_s23   ;;  %s1526_s18 = smov %s1212_s19 }
  0xeb   : > { %p17_p1 = scmp.ge.s32.totalorder %s20_s23, 4   ;;  %s1527_s19 = smov %s1216_s20 }
  0xec   : > { %s1528_s20 = smov %s1338_s16  ;;  %s1529_s21 = smov %s1224_s22 }
  0xed   : > { %s1530_s22 = smov %s1532_s9  ;;  %19 = sbr.rel (!%p17_p1) target bundleno = 5 (0x5), region = 107 }
  0xf2   :  { %796 = vsyncpa [#allocation3], 1 }
  0xf3   :  { %798 = vsyncpa [#allocation3 + $0x1], 1 }
  0xf4   :  { %799 = vsyncpa [#allocation5], 1 }

</bundles_post_ra>
